<compile_context>
chip_gen: v5e
topology: v5e:2x2
jax: 0.10.0
libtpu: 0.0.40
codegen_flags: <defaults>
</compile_context>

<pallas_src>
import jax
import jax.numpy as jnp
from jax.experimental import pallas as pl
from jax.experimental.pallas import tpu as pltpu


_CHUNK_BYTES_THRESHOLD = 4 << 20   # split the DMA only for params >= 4 MiB
_DEFAULT_NUM_CHUNKS = 4            # review: K = 2-4 DMA descriptors


# ---------------------------------------------------------------------------
# Recommended (zero-copy) path
# ---------------------------------------------------------------------------
def trainable_query_provider_forward(query: jax.Array) -> jax.Array:
    """Equivalent of TrainableQueryProvider.forward(x=None).

    Metadata-only batch-dim prepend: no HBM traffic, no kernel dispatch.
    """
    return query[None, ...]


# ---------------------------------------------------------------------------
# Pallas kernel path (kept for the exercise / fusion contexts)
# ---------------------------------------------------------------------------
def _single_dma_kernel(q_hbm_ref, o_hbm_ref):
    # q_hbm_ref : (n, c) raw HBM ref
    # o_hbm_ref : (1, n, c) raw HBM ref
    # One blocking HBM->HBM copy into the (squeezed) batch-0 view of the
    # output.  No semaphore scratch needed (sync_copy manages its own).
    pltpu.sync_copy(q_hbm_ref, o_hbm_ref.at[0])


def _row_chunks(n_rows: int, num_chunks: int):
    """Static, row-aligned (multiple-of-8 sublane) chunk boundaries."""
    rows = max(8, -(-n_rows // num_chunks))   # ceil divide
    rows = -(-rows // 8) * 8                  # round up to multiple of 8
    bounds = []
    start = 0
    while start < n_rows:
        size = min(rows, n_rows - start)
        bounds.append((start, size))
        start += size
    return tuple(bounds)


def _make_chunked_kernel(bounds):
    def kernel(q_hbm_ref, o_hbm_ref, sems):
        # Issue all chunk DMAs first (each on its own semaphore), then wait.
        copies = []
        for i, (start, size) in enumerate(bounds):   # static Python unroll
            cp = pltpu.make_async_copy(
                q_hbm_ref.at[pl.ds(start, size), :],
                o_hbm_ref.at[0, pl.ds(start, size), :],
                sems.at[i],
            )
            cp.start()
            copies.append(cp)
        for cp in copies:
            cp.wait()
    return kernel


def trainable_query_provider_forward_pallas(query: jax.Array,
                                             num_chunks: int | None = None
                                             ) -> jax.Array:
    """Pallas version: HBM->HBM DMA copy with a prepended batch dim.

    query: (num_queries, num_query_channels)
    returns: (1, num_queries, num_query_channels)
    """
    n, c = query.shape
    total_bytes = n * c * jnp.dtype(query.dtype).itemsize
    if num_chunks is None:
        num_chunks = (_DEFAULT_NUM_CHUNKS
                      if total_bytes >= _CHUNK_BYTES_THRESHOLD else 1)
    # Chunks must cover >= 8 rows each to stay sublane-aligned.
    num_chunks = max(1, min(int(num_chunks), max(1, n // 8)))

    common = dict(
        out_shape=jax.ShapeDtypeStruct((1, n, c), query.dtype),
        in_specs=[pl.BlockSpec(memory_space=pl.ANY)],   # raw HBM, no auto-DMA
        out_specs=pl.BlockSpec(memory_space=pl.ANY),    # raw HBM, no auto-DMA
    )

    if num_chunks == 1:
        return pl.pallas_call(_single_dma_kernel, **common)(query)

    bounds = _row_chunks(n, num_chunks)
    kernel = _make_chunked_kernel(bounds)
    return pl.pallas_call(
        kernel,
        scratch_shapes=[pltpu.SemaphoreType.DMA((len(bounds),))],
        **common,
    )(query)


# ---------------------------------------------------------------------------
# Parameter init (stand-in for nn.Parameter(...).normal_(0.0, init_scale))
# ---------------------------------------------------------------------------
def init_trainable_query(key, num_queries: int, num_query_channels: int,
                         init_scale: float = 0.02, dtype=jnp.float32):
    return (init_scale *
            jax.random.normal(key, (num_queries, num_query_channels))
            ).astype(dtype)


if __name__ == "__main__":
    key = jax.random.PRNGKey(0)
    k0, k1 = jax.random.split(key)

    # --- default tiny shape (matches the module's typical latent array) ---
    num_queries, num_query_channels, init_scale = 8, 32, 0.02
    q_small = init_trainable_query(k0, num_queries, num_query_channels,
                                   init_scale)

    out = jax.block_until_ready(trainable_query_provider_forward_pallas(q_small))
    assert out.shape == (1, num_queries, num_query_channels), out.shape
    assert out.dtype == q_small.dtype
    assert bool(jnp.allclose(out, q_small[None, ...])), "pallas path mismatch"

    # Recommended zero-copy path must match as well.
    out0 = jax.block_until_ready(trainable_query_provider_forward(q_small))
    assert out0.shape == (1, num_queries, num_query_channels)
    assert bool(jnp.array_equal(out0, q_small[None, ...])), "reshape path mismatch"

    # --- exercise the chunked multi-DMA path on a small (64, 128) param ---
    q_big = init_trainable_query(k1, 64, 128, init_scale)
    out_big = jax.block_until_ready(
        trainable_query_provider_forward_pallas(q_big, num_chunks=4))
    assert out_big.shape == (1, 64, 128), out_big.shape
    assert bool(jnp.allclose(out_big, q_big[None, ...])), "chunked path mismatch"

    print("KERNEL_OK")
</pallas_src>

<mosaic_0001>
module attributes {stable_mosaic.version = 11 : i64} {
  func.func @_single_dma_kernel(%arg0: memref<8x32xf32, #tpu.memory_space<any>>, %arg1: memref<1x8x32xf32, #tpu.memory_space<any>>) attributes {dimension_semantics = [], scalar_prefetch = 0 : i64, scratch_operands = 0 : i64, tpu.core_type = #tpu.core_type<tc>} {
    %c0_i32 = arith.constant 0 : i32
    "tpu.region"() ({
      %0 = tpu.sem_alloc : memref<!tpu.dma_semaphore, #tpu.memory_space<semaphore_mem>>
      %c0_i32_0 = arith.constant 0 : i32
      %c0_i32_1 = arith.constant 0 : i32
      %1 = tpu.memref_slice %arg1[%c0_i32, %c0_i32_0, %c0_i32_1] : memref<1x8x32xf32, #tpu.memory_space<any>> -> memref<1x8x32xf32, #tpu.memory_space<any>>
      %2 = tpu.memref_squeeze %1 : memref<1x8x32xf32, #tpu.memory_space<any>> -> memref<8x32xf32, #tpu.memory_space<any>>
      tpu.enqueue_dma source(%arg0 : memref<8x32xf32, #tpu.memory_space<any>>) target(%2 : memref<8x32xf32, #tpu.memory_space<any>>) target_semaphore(%0 : memref<!tpu.dma_semaphore, #tpu.memory_space<semaphore_mem>>)
      %c0_i32_2 = arith.constant 0 : i32
      %c0_i32_3 = arith.constant 0 : i32
      %3 = tpu.memref_slice %arg1[%c0_i32, %c0_i32_2, %c0_i32_3] : memref<1x8x32xf32, #tpu.memory_space<any>> -> memref<1x8x32xf32, #tpu.memory_space<any>>
      %4 = tpu.memref_squeeze %3 : memref<1x8x32xf32, #tpu.memory_space<any>> -> memref<8x32xf32, #tpu.memory_space<any>>
      tpu.wait_dma2 semaphore(%0 : memref<!tpu.dma_semaphore, #tpu.memory_space<semaphore_mem>>) src(%arg0 : memref<8x32xf32, #tpu.memory_space<any>>) dst(%4 : memref<8x32xf32, #tpu.memory_space<any>>)
      tpu.yield
    }) : () -> ()
    return
  }
}

</mosaic_0001>

<bundles_post_ra>
// kernel: tpu_custom_call.1
= control target key start
LH: loop header
LB: loop body
LE: loop exit
PB: predicated region body
PF: predicated region fallthrough
CT: control target
= control target key end

     0   :  { %s25_s12 = smov [#allocation2]   ;;  %s26_s13 = smov [#allocation3]   ;;  %s44_s0 = inlined_call_operand.hbm [shape: f32[8,32], index: 0, kind: input, shape index: {}]   ;;  %s45_s1 = inlined_call_operand.hbm [shape: f32[1,8,32], index: 1, kind: output, shape index: {}]  }
   0x1   :  { %s10_s8 = sshll.u32 %s44_s0, 4  ;;  %s12_s11 = sshll.u32 %s45_s1, 4  ;;  %s11_s8 = int_to_ptr.hbm [resolvable:$true] %s10_s8  ;;  %s13_s11 = int_to_ptr.hbm [resolvable:$true] %s12_s11 }
   0x2   :  { %s27_s14 = smov 0  }
   0x3   :  { %16 = dma.general %s11_s8, 128, %s13_s11, %s25_s12, %s26_s13, [#allocation4], %s27_s14, 0  }
   0x4   :  { %23 = dma.done.wait [#allocation2], 128 }
   0x5   :  { %24 = vsyncadd [#allocation2], 4294967168 }

</bundles_post_ra>
